<compile_context>
chip_gen: v6e
topology: v6e:2x2x1
jax: 0.10.0
libtpu: 0.0.40
codegen_flags: <defaults>
</compile_context>

<pallas_src>
import functools

import jax
import jax.numpy as jnp
from jax.experimental import pallas as pl
from jax.experimental.pallas import tpu as pltpu


# ----------------------------- Pallas kernel --------------------------------
def transformer_block_kernel(
    x_ref,      # (Bb*T, E)   f32
    wqkv_ref,   # (E, 3*H*D)  compute dtype; Q columns pre-scaled by 1/sqrt(D)
    wo_ref,     # (H*D, E)    compute dtype; head-major rows (torch interleave folded in)
    w1_ref,     # (E, 4E)     compute dtype
    b1_ref,     # (1, 4E)     f32
    w2_ref,     # (4E, E)     compute dtype
    pk_ref,     # (8, E)      f32: rows = [bo, b2, gamma1, beta1, gamma2, beta2, 0, 0]
    o_ref,      # (Bb*T, E)   f32
    *,
    batches: int,
    seq: int,
    num_heads: int,
    head_size: int,
    ffn_chunk: int,
    head_batching: bool,
    eps: float = 1e-5,
):
    Bb, T, H, D = batches, seq, num_heads, head_size
    HD = H * D
    R = Bb * T
    E = x_ref.shape[-1]
    cd = wqkv_ref.dtype                      # matmul operand dtype (bf16 or f32)

    x = x_ref[...]                           # (R, E) f32
    pk = pk_ref[...]                         # (8, E) f32
    bo, b2 = pk[0], pk[1]
    g1, be1, g2, be2 = pk[2], pk[3], pk[4], pk[5]

    # ---- fused QKV projection (scale already folded into the Q columns) ----
    qkv = jnp.dot(x.astype(cd), wqkv_ref[...],
                  preferred_element_type=jnp.float32)          # (R, 3*HD) f32

    # ---- causal mask as a single additive bias, built once ----
    row = jax.lax.broadcasted_iota(jnp.int32, (T, T), 0)
    col = jax.lax.broadcasted_iota(jnp.int32, (T, T), 1)
    neg = jnp.where(col <= row, 0.0, -1e30).astype(jnp.float32)[None]   # (1, T, T)

    if head_batching:
        # Fully batched form (production shapes: D, HD multiples of 128).
        qkv5 = qkv.reshape(Bb, T, 3, H, D)
        q, k, v = qkv5[:, :, 0], qkv5[:, :, 1], qkv5[:, :, 2]           # (Bb, T, H, D)
        s = jnp.einsum("bqhd,bkhd->bhqk", q, k,
                       preferred_element_type=jnp.float32)              # (Bb, H, T, T)
        s = s + neg[:, None]
        p = jnp.exp(s - jnp.max(s, axis=-1, keepdims=True))
        p = p / jnp.sum(p, axis=-1, keepdims=True)                      # exact division
        att = jnp.einsum("bhqk,bkhd->bqhd", p, v,
                         preferred_element_type=jnp.float32)            # (Bb, T, H, D)
        att = att.reshape(R, HD)
    else:
        # Per-head loop (sub-(8,128) toy shapes); mask/scale work already hoisted out.
        head_outs = []
        for h in range(H):
            q = qkv[:, h * D:(h + 1) * D].reshape(Bb, T, D)
            k = qkv[:, HD + h * D:HD + (h + 1) * D].reshape(Bb, T, D)
            v = qkv[:, 2 * HD + h * D:2 * HD + (h + 1) * D].reshape(Bb, T, D)
            s = jnp.einsum("bqd,bkd->bqk", q, k,
                           preferred_element_type=jnp.float32) + neg    # (Bb, T, T)
            p = jnp.exp(s - jnp.max(s, axis=-1, keepdims=True))
            p = p / jnp.sum(p, axis=-1, keepdims=True)                  # exact division
            head_outs.append(jnp.einsum("bqk,bkd->bqd", p, v,
                                        preferred_element_type=jnp.float32))
        att = jnp.concatenate(head_outs, axis=-1).reshape(R, HD)        # head-major

    # ---- fused output projection (torch interleave folded into wo_ref) ----
    mha = jnp.dot(att.astype(cd), wo_ref[...],
                  preferred_element_type=jnp.float32) + bo

    # ---- residual + LayerNorm 1 (f32) ----
    x1 = x + mha
    mu1 = jnp.mean(x1, axis=-1, keepdims=True)
    var1 = jnp.mean((x1 - mu1) ** 2, axis=-1, keepdims=True)
    x1n = (x1 - mu1) * jax.lax.rsqrt(var1 + eps) * g1 + be1

    # ---- feed forward, chunked over the hidden dim ----
    hidden = w1_ref.shape[1]
    n_chunks = hidden // ffn_chunk
    b1v = b1_ref[...]                                                   # (1, hidden)
    x1c = x1n.astype(cd)
    ff = jnp.zeros((R, E), jnp.float32)
    for c in range(n_chunks):
        lo = c * ffn_chunk
        h1 = jnp.dot(x1c, w1_ref[:, lo:lo + ffn_chunk],
                     preferred_element_type=jnp.float32) + b1v[0, lo:lo + ffn_chunk]
        h1 = jnp.maximum(h1, 0.0)
        ff = ff + jnp.dot(h1.astype(cd), w2_ref[lo:lo + ffn_chunk, :],
                          preferred_element_type=jnp.float32)
    ff = ff + b2

    # ---- residual + LayerNorm 2 (f32) ----
    x2 = x1n + ff
    mu2 = jnp.mean(x2, axis=-1, keepdims=True)
    var2 = jnp.mean((x2 - mu2) ** 2, axis=-1, keepdims=True)
    o_ref[...] = (x2 - mu2) * jax.lax.rsqrt(var2 + eps) * g2 + be2


# ------------------------------ wrapper --------------------------------------
def transformer_block(x, params, *, num_heads, head_size,
                      compute_dtype=jnp.bfloat16, batches_per_block=None,
                      ffn_chunk=512, head_batching=None):
    """x: (B, T, E) float32.  params = (wqkv, wo_hm, w1, b1_2d, w2, packed8xE).

    compute_dtype: dtype of matmul operands (bf16 default; f32 for exact fidelity).
    batches_per_block=None: whole batch in one grid step on v5e/v6e (1 TensorCore,
    avoids the ~0.35us/step overhead); auto-split into >=2 parallel steps on v7x.
    """
    B, T, E = x.shape
    H, D = num_heads, head_size
    HD = H * D
    wqkv, wo, w1, b1, w2, packed = params
    hidden = w1.shape[1]

    # --- grid / row-block choice ---
    if batches_per_block is None:
        bb = B
        try:
            kind = jax.devices()[0].device_kind.lower()
            # v7x has 2 TensorCores: keep >=2 'parallel' grid steps so neither idles.
            if "v7" in kind and B % 2 == 0 and ((B // 2) * T) % 8 == 0:
                bb = B // 2
        except Exception:
            bb = B
    else:
        bb = batches_per_block
    assert B % bb == 0
    rows = bb * T
    if bb != B:
        # (8,128) rule: the (rows, E) block must have rows % 8 == 0 unless full-extent.
        assert rows % 8 == 0, "bb*T must be a multiple of 8 (pad T) when bb < B"

    # --- attention path: fully batched only when the head dim is lane-aligned ---
    if head_batching is None:
        head_batching = (D % 128 == 0) and (T % 8 == 0)

    # --- FFN chunking (keeps h1 from being fully live when 4E is large) ---
    chunk = min(ffn_chunk, hidden)
    if hidden % chunk != 0:
        chunk = hidden

    # --- compute-dtype weights (halves weight DMA/VMEM when bf16) ---
    cd = jnp.dtype(compute_dtype)
    wqkv_c, wo_c, w1_c, w2_c = (a.astype(cd) for a in (wqkv, wo, w1, w2))

    x_flat = x.reshape(B * T, E)

    kernel = functools.partial(
        transformer_block_kernel, batches=bb, seq=T, num_heads=H, head_size=D,
        ffn_chunk=chunk, head_batching=head_batching)

    def const_spec(a):
        return pl.BlockSpec(a.shape, lambda i: (0,) * a.ndim)

    # --- advisory cost estimate ---
    bt = B * T
    flops = int(2 * bt * E * 3 * HD          # fused QKV
                + 2 * 2 * B * H * T * T * D  # scores + PV
                + 2 * bt * HD * E            # output projection
                + 2 * 2 * bt * E * hidden)   # FFN
    transcendentals = int(B * H * T * T + 4 * bt)
    in_arrays = (x_flat, wqkv_c, wo_c, w1_c, b1, w2_c, packed)
    nbytes = lambda a: int(a.size) * jnp.dtype(a.dtype).itemsize
    bytes_accessed = int(sum(nbytes(a) for a in in_arrays) + bt * E * 4)

    # --- explicit VMEM budget (double-buffered inputs + live intermediates) ---
    # TODO(synk): at production sizes, give the never-changing weight BlockSpecs
    # pipeline_mode=pl.Buffered(1) to halve their footprint (v7x has only 64 MiB VMEM).
    weight_bytes = sum(nbytes(a) for a in (wqkv_c, wo_c, w1_c, w2_c, b1, packed))
    io_bytes = 2 * rows * E * 4
    inter_bytes = 4 * (rows * (3 * HD + HD + chunk + 8 * E) + 3 * bb * H * T * T)
    budget = 2 * (weight_bytes + io_bytes) + inter_bytes + (4 << 20)
    vmem_limit = int(min(max(budget, 32 << 20), 64 << 20))

    out_flat = pl.pallas_call(
        kernel,
        out_shape=jax.ShapeDtypeStruct((B * T, E), jnp.float32),
        grid_spec=pltpu.PrefetchScalarGridSpec(
            num_scalar_prefetch=0,
            grid=(B // bb,),
            in_specs=[
                pl.BlockSpec((rows, E), lambda i: (i, 0)),   # x rows
                const_spec(wqkv_c),                          # fused QKV weight
                const_spec(wo_c),                            # output projection
                const_spec(w1_c),                            # FFN linear1
                const_spec(b1),                              # FFN bias1 (1, 4E)
                const_spec(w2_c),                            # FFN linear2
                const_spec(packed),                          # packed biases / LN params
            ],
            out_specs=pl.BlockSpec((rows, E), lambda i: (i, 0)),
        ),
        compiler_params=pltpu.CompilerParams(
            dimension_semantics=("parallel",),
            vmem_limit_bytes=vmem_limit,
        ),
        cost_estimate=pl.CostEstimate(
            flops=flops, transcendentals=transcendentals,
            bytes_accessed=bytes_accessed),
    )(x_flat, wqkv_c, wo_c, w1_c, b1, w2_c, packed)

    return out_flat.reshape(B, T, E)


# --------------------------- pure-JAX reference -------------------------------
def reference_block(x, raw_params, *, num_heads, head_size, eps=1e-5):
    """Direct transcription of the PyTorch forward (dropout = identity)."""
    (wq, wk, wv, wo, bo, w1, b1, w2, b2, g1, be1, g2, be2) = raw_params
    B, T, E = x.shape
    H, D = num_heads, head_size

    heads = []
    tril = jnp.tril(jnp.ones((T, T), jnp.float32))
    for h in range(H):
        q = x @ wq[h]
        k = x @ wk[h]
        v = x @ wv[h]
        s = (q @ jnp.swapaxes(k, -2, -1)) / (D ** 0.5)
        s = jnp.where(tril == 0, -jnp.inf, s)
        p = jax.nn.softmax(s, axis=-1)
        heads.append(p @ v)
    cat = jnp.stack(heads, axis=3)            # (B, T, D, H) -- matches torch.stack(dim=3)
    cat = cat.reshape(B, T, H * D)            # matches .view(...)
    mha = cat @ wo + bo

    def ln(z, g, b):
        mu = jnp.mean(z, axis=-1, keepdims=True)
        var = jnp.mean((z - mu) ** 2, axis=-1, keepdims=True)
        return (z - mu) / jnp.sqrt(var + eps) * g + b

    x1 = ln(x + mha, g1, be1)
    ff = jnp.maximum(x1 @ w1 + b1, 0.0) @ w2 + b2
    return ln(x1 + ff, g2, be2)


# ------------------------------- main -----------------------------------------
if __name__ == "__main__":
    # Small shapes consistent with the module.
    B = 2
    E = 32                    # embedding_dim
    T = 8                     # context_len == seq len (tril mask requires T == context_len)
    num_heads_arg = 8
    D = E // num_heads_arg    # head_size = 4
    H = D                     # quirk: MultiHeadAttention gets num_heads = head_size -> 4 heads
    HD = H * D
    hidden = 4 * E

    key = jax.random.PRNGKey(0)
    ks = jax.random.split(key, 16)
    scale_w = 0.1
    wq = scale_w * jax.random.normal(ks[0], (H, E, D), jnp.float32)
    wk = scale_w * jax.random.normal(ks[1], (H, E, D), jnp.float32)
    wv = scale_w * jax.random.normal(ks[2], (H, E, D), jnp.float32)
    wo = scale_w * jax.random.normal(ks[3], (HD, E), jnp.float32)   # (in=H*D, out=E)
    bo = scale_w * jax.random.normal(ks[4], (E,), jnp.float32)
    w1 = scale_w * jax.random.normal(ks[5], (E, hidden), jnp.float32)
    b1 = scale_w * jax.random.normal(ks[6], (hidden,), jnp.float32)
    w2 = scale_w * jax.random.normal(ks[7], (hidden, E), jnp.float32)
    b2 = scale_w * jax.random.normal(ks[8], (E,), jnp.float32)
    g1 = jnp.ones((E,), jnp.float32)
    be1 = jnp.zeros((E,), jnp.float32)
    g2 = jnp.ones((E,), jnp.float32)
    be2 = jnp.zeros((E,), jnp.float32)

    x = jax.random.normal(ks[9], (B, T, E), jnp.float32)

    # ---- host-side weight repacking (pure layout plumbing, done once) ----
    # Fused QKV: columns [q heads | k heads | v heads], head-major; 1/sqrt(D) folded
    # into the Q columns so the kernel has no per-head scale multiply.
    inv_sqrt_d = 1.0 / (D ** 0.5)
    wq_f = (jnp.transpose(wq, (1, 0, 2)) * inv_sqrt_d).reshape(E, HD)
    wk_f = jnp.transpose(wk, (1, 0, 2)).reshape(E, HD)
    wv_f = jnp.transpose(wv, (1, 0, 2)).reshape(E, HD)
    wqkv = jnp.concatenate([wq_f, wk_f, wv_f], axis=1)            # (E, 3*HD)
    # Fold the stack(dim=3).view interleave into the output projection:
    # cat[:, :, d*H + h] = head_h[:, :, d]  ==>  wo_hm[h*D + d, :] = wo[d*H + h, :]
    wo_hm = jnp.transpose(wo.reshape(D, H, E), (1, 0, 2)).reshape(HD, E)
    # Pack the six (E,)-wide params into one (8, E) input (single DMA window).
    packed = jnp.zeros((8, E), jnp.float32)
    packed = packed.at[0].set(bo).at[1].set(b2)
    packed = packed.at[2].set(g1).at[3].set(be1).at[4].set(g2).at[5].set(be2)

    kernel_params = (wqkv, wo_hm, w1, b1.reshape(1, hidden), w2, packed)
    raw_params = (wq, wk, wv, wo, bo, w1, b1, w2, b2, g1, be1, g2, be2)

    # TODO(synk): dropout layers are identity here (eval mode / p=0.0); no RNG dropout in-kernel.
    out_bf16 = transformer_block(x, kernel_params, num_heads=H, head_size=D,
                                 compute_dtype=jnp.bfloat16)
    out_bf16 = jax.block_until_ready(out_bf16)
    out_f32 = transformer_block(x, kernel_params, num_heads=H, head_size=D,
                                compute_dtype=jnp.float32)
    out_f32 = jax.block_until_ready(out_f32)

    ref = reference_block(x, raw_params, num_heads=H, head_size=D)
    assert out_bf16.shape == (B, T, E) and out_f32.shape == (B, T, E)

    # f32 matmul path + exact softmax division: tight agreement with the f32 reference.
    err32 = float(jnp.max(jnp.abs(out_f32 - ref)))
    assert jnp.allclose(out_f32, ref, atol=2e-3, rtol=2e-3), err32
    # bf16 matmul operands (f32 accumulation): tolerance reflects bf16 input rounding only.
    errbf = float(jnp.max(jnp.abs(out_bf16 - ref)))
    assert jnp.allclose(out_bf16, ref, atol=6e-2, rtol=6e-2), errbf

    print("KERNEL_OK")
</pallas_src>

<mosaic_0001>
module attributes {stable_mosaic.version = 11 : i64} {
  func.func @transformer_block_kernel(%arg0: i32, %arg1: memref<16x32xf32, #tpu.memory_space<vmem>>, %arg2: memref<32x48xbf16, #tpu.memory_space<vmem>>, %arg3: memref<16x32xbf16, #tpu.memory_space<vmem>>, %arg4: memref<32x128xbf16, #tpu.memory_space<vmem>>, %arg5: memref<1x128xf32, #tpu.memory_space<vmem>>, %arg6: memref<128x32xbf16, #tpu.memory_space<vmem>>, %arg7: memref<8x32xf32, #tpu.memory_space<vmem>>, %arg8: memref<16x32xf32, #tpu.memory_space<vmem>>) attributes {dimension_semantics = [#tpu.dimension_semantics<parallel>], iteration_bounds = array<i64: 1>, scalar_prefetch = 0 : i64, scratch_operands = 0 : i64, tpu.core_type = #tpu.core_type<tc>, window_params = [{transform_indices = @transform_0, window_bounds = array<i64: 16, 32>}, {pipeline_mode = #tpu.pipeline_mode<synchronous>, transform_indices = @transform_1, window_bounds = array<i64: 32, 48>}, {pipeline_mode = #tpu.pipeline_mode<synchronous>, transform_indices = @transform_2, window_bounds = array<i64: 16, 32>}, {pipeline_mode = #tpu.pipeline_mode<synchronous>, transform_indices = @transform_3, window_bounds = array<i64: 32, 128>}, {pipeline_mode = #tpu.pipeline_mode<synchronous>, transform_indices = @transform_4, window_bounds = array<i64: 1, 128>}, {pipeline_mode = #tpu.pipeline_mode<synchronous>, transform_indices = @transform_5, window_bounds = array<i64: 128, 32>}, {pipeline_mode = #tpu.pipeline_mode<synchronous>, transform_indices = @transform_6, window_bounds = array<i64: 8, 32>}, {transform_indices = @transform_7, window_bounds = array<i64: 16, 32>}]} {
    %c0 = arith.constant 0 : index
    %c0_0 = arith.constant 0 : index
    %0 = vector.load %arg1[%c0, %c0_0] : memref<16x32xf32, #tpu.memory_space<vmem>>, vector<16x32xf32>
    %c0_1 = arith.constant 0 : index
    %c0_2 = arith.constant 0 : index
    %1 = vector.load %arg7[%c0_1, %c0_2] : memref<8x32xf32, #tpu.memory_space<vmem>>, vector<8x32xf32>
    %2 = vector.extract_strided_slice %1 {offsets = [0, 0], sizes = [1, 32], strides = [1, 1]} : vector<8x32xf32> to vector<1x32xf32>
    %3 = vector.shape_cast %2 : vector<1x32xf32> to vector<32xf32>
    %4 = vector.extract_strided_slice %1 {offsets = [1, 0], sizes = [1, 32], strides = [1, 1]} : vector<8x32xf32> to vector<1x32xf32>
    %5 = vector.shape_cast %4 : vector<1x32xf32> to vector<32xf32>
    %6 = vector.extract_strided_slice %1 {offsets = [2, 0], sizes = [1, 32], strides = [1, 1]} : vector<8x32xf32> to vector<1x32xf32>
    %7 = vector.shape_cast %6 : vector<1x32xf32> to vector<32xf32>
    %8 = vector.extract_strided_slice %1 {offsets = [3, 0], sizes = [1, 32], strides = [1, 1]} : vector<8x32xf32> to vector<1x32xf32>
    %9 = vector.shape_cast %8 : vector<1x32xf32> to vector<32xf32>
    %10 = vector.extract_strided_slice %1 {offsets = [4, 0], sizes = [1, 32], strides = [1, 1]} : vector<8x32xf32> to vector<1x32xf32>
    %11 = vector.shape_cast %10 : vector<1x32xf32> to vector<32xf32>
    %12 = vector.extract_strided_slice %1 {offsets = [5, 0], sizes = [1, 32], strides = [1, 1]} : vector<8x32xf32> to vector<1x32xf32>
    %13 = vector.shape_cast %12 : vector<1x32xf32> to vector<32xf32>
    %14 = arith.truncf %0 : vector<16x32xf32> to vector<16x32xbf16>
    %c0_3 = arith.constant 0 : index
    %c0_4 = arith.constant 0 : index
    %15 = vector.load %arg2[%c0_3, %c0_4] : memref<32x48xbf16, #tpu.memory_space<vmem>>, vector<32x48xbf16>
    %cst = arith.constant dense<0.000000e+00> : vector<16x48xf32>
    %16 = tpu.matmul %14, %15, %cst {dimension_numbers = #tpu.dot_dimension_numbers<[1], [0], [0], [1], [0, 0, 1, 1], [], []>} : vector<16x32xbf16>, vector<32x48xbf16>, vector<16x48xf32> -> vector<16x48xf32>
    %17 = tpu.iota {dimensions = array<i32: 0>} : vector<8x8xi32>
    %18 = tpu.iota {dimensions = array<i32: 1>} : vector<8x8xi32>
    %19 = arith.cmpi sle, %18, %17 : vector<8x8xi32>
    %cst_5 = arith.constant 0.000000e+00 : f32
    %cst_6 = arith.constant -1.000000e+30 : f32
    %20 = vector.broadcast %cst_5 : f32 to vector<8x8xf32>
    %21 = vector.broadcast %cst_6 : f32 to vector<8x8xf32>
    %22 = arith.select %19, %20, %21 : vector<8x8xi1>, vector<8x8xf32>
    %23 = vector.shape_cast %22 : vector<8x8xf32> to vector<1x8x8xf32>
    %24 = vector.extract_strided_slice %16 {offsets = [0, 0], sizes = [16, 4], strides = [1, 1]} : vector<16x48xf32> to vector<16x4xf32>
    %25 = vector.shape_cast %24 : vector<16x4xf32> to vector<2x8x4xf32>
    %26 = vector.extract_strided_slice %16 {offsets = [0, 16], sizes = [16, 4], strides = [1, 1]} : vector<16x48xf32> to vector<16x4xf32>
    %27 = vector.shape_cast %26 : vector<16x4xf32> to vector<2x8x4xf32>
    %28 = vector.extract_strided_slice %16 {offsets = [0, 32], sizes = [16, 4], strides = [1, 1]} : vector<16x48xf32> to vector<16x4xf32>
    %29 = vector.shape_cast %28 : vector<16x4xf32> to vector<2x8x4xf32>
    "tpu.trace_start"() <{level = 10 : i32, message = "bqd,bkd->bqk"}> : () -> ()
    %cst_7 = arith.constant dense<0.000000e+00> : vector<2x8x8xf32>
    %30 = tpu.matmul %25, %27, %cst_7 {dimension_numbers = #tpu.dot_dimension_numbers<[2], [2], [1], [1], [0, 0, 0, 1, 1, 1], [0], [0]>} : vector<2x8x4xf32>, vector<2x8x4xf32>, vector<2x8x8xf32> -> vector<2x8x8xf32>
    "tpu.trace_stop"() : () -> ()
    %31 = vector.broadcast %23 : vector<1x8x8xf32> to vector<2x8x8xf32>
    %32 = arith.addf %30, %31 : vector<2x8x8xf32>
    %cst_8 = arith.constant dense<0xFF800000> : vector<2x8xf32>
    %33 = vector.multi_reduction <maximumf>, %32, %cst_8 [2] : vector<2x8x8xf32> to vector<2x8xf32>
    %34 = vector.shape_cast %33 : vector<2x8xf32> to vector<2x8x1xf32>
    %35 = vector.broadcast %34 : vector<2x8x1xf32> to vector<2x8x8xf32>
    %36 = arith.subf %32, %35 : vector<2x8x8xf32>
    %37 = math.exp %36 : vector<2x8x8xf32>
    %cst_9 = arith.constant dense<0.000000e+00> : vector<2x8xf32>
    %38 = vector.multi_reduction <add>, %37, %cst_9 [2] : vector<2x8x8xf32> to vector<2x8xf32>
    %39 = vector.shape_cast %38 : vector<2x8xf32> to vector<2x8x1xf32>
    %40 = vector.broadcast %39 : vector<2x8x1xf32> to vector<2x8x8xf32>
    %41 = arith.divf %37, %40 : vector<2x8x8xf32>
    "tpu.trace_start"() <{level = 10 : i32, message = "bqk,bkd->bqd"}> : () -> ()
    %cst_10 = arith.constant dense<0.000000e+00> : vector<2x8x4xf32>
    %42 = tpu.matmul %41, %29, %cst_10 {dimension_numbers = #tpu.dot_dimension_numbers<[2], [1], [1], [2], [0, 0, 0, 1, 1, 2], [0], [0]>} : vector<2x8x8xf32>, vector<2x8x4xf32>, vector<2x8x4xf32> -> vector<2x8x4xf32>
    "tpu.trace_stop"() : () -> ()
    %43 = vector.extract_strided_slice %16 {offsets = [0, 4], sizes = [16, 4], strides = [1, 1]} : vector<16x48xf32> to vector<16x4xf32>
    %44 = vector.shape_cast %43 : vector<16x4xf32> to vector<2x8x4xf32>
    %45 = vector.extract_strided_slice %16 {offsets = [0, 20], sizes = [16, 4], strides = [1, 1]} : vector<16x48xf32> to vector<16x4xf32>
    %46 = vector.shape_cast %45 : vector<16x4xf32> to vector<2x8x4xf32>
    %47 = vector.extract_strided_slice %16 {offsets = [0, 36], sizes = [16, 4], strides = [1, 1]} : vector<16x48xf32> to vector<16x4xf32>
    %48 = vector.shape_cast %47 : vector<16x4xf32> to vector<2x8x4xf32>
    "tpu.trace_start"() <{level = 10 : i32, message = "bqd,bkd->bqk"}> : () -> ()
    %cst_11 = arith.constant dense<0.000000e+00> : vector<2x8x8xf32>
    %49 = tpu.matmul %44, %46, %cst_11 {dimension_numbers = #tpu.dot_dimension_numbers<[2], [2], [1], [1], [0, 0, 0, 1, 1, 1], [0], [0]>} : vector<2x8x4xf32>, vector<2x8x4xf32>, vector<2x8x8xf32> -> vector<2x8x8xf32>
    "tpu.trace_stop"() : () -> ()
    %50 = vector.broadcast %23 : vector<1x8x8xf32> to vector<2x8x8xf32>
    %51 = arith.addf %49, %50 : vector<2x8x8xf32>
    %cst_12 = arith.constant dense<0xFF800000> : vector<2x8xf32>
    %52 = vector.multi_reduction <maximumf>, %51, %cst_12 [2] : vector<2x8x8xf32> to vector<2x8xf32>
    %53 = vector.shape_cast %52 : vector<2x8xf32> to vector<2x8x1xf32>
    %54 = vector.broadcast %53 : vector<2x8x1xf32> to vector<2x8x8xf32>
    %55 = arith.subf %51, %54 : vector<2x8x8xf32>
    %56 = math.exp %55 : vector<2x8x8xf32>
    %cst_13 = arith.constant dense<0.000000e+00> : vector<2x8xf32>
    %57 = vector.multi_reduction <add>, %56, %cst_13 [2] : vector<2x8x8xf32> to vector<2x8xf32>
    %58 = vector.shape_cast %57 : vector<2x8xf32> to vector<2x8x1xf32>
    %59 = vector.broadcast %58 : vector<2x8x1xf32> to vector<2x8x8xf32>
    %60 = arith.divf %56, %59 : vector<2x8x8xf32>
    "tpu.trace_start"() <{level = 10 : i32, message = "bqk,bkd->bqd"}> : () -> ()
    %cst_14 = arith.constant dense<0.000000e+00> : vector<2x8x4xf32>
    %61 = tpu.matmul %60, %48, %cst_14 {dimension_numbers = #tpu.dot_dimension_numbers<[2], [1], [1], [2], [0, 0, 0, 1, 1, 2], [0], [0]>} : vector<2x8x8xf32>, vector<2x8x4xf32>, vector<2x8x4xf32> -> vector<2x8x4xf32>
    "tpu.trace_stop"() : () -> ()
    %62 = vector.extract_strided_slice %16 {offsets = [0, 8], sizes = [16, 4], strides = [1, 1]} : vector<16x48xf32> to vector<16x4xf32>
    %63 = vector.shape_cast %62 : vector<16x4xf32> to vector<2x8x4xf32>
    %64 = vector.extract_strided_slice %16 {offsets = [0, 24], sizes = [16, 4], strides = [1, 1]} : vector<16x48xf32> to vector<16x4xf32>
    %65 = vector.shape_cast %64 : vector<16x4xf32> to vector<2x8x4xf32>
    %66 = vector.extract_strided_slice %16 {offsets = [0, 40], sizes = [16, 4], strides = [1, 1]} : vector<16x48xf32> to vector<16x4xf32>
    %67 = vector.shape_cast %66 : vector<16x4xf32> to vector<2x8x4xf32>
    "tpu.trace_start"() <{level = 10 : i32, message = "bqd,bkd->bqk"}> : () -> ()
    %cst_15 = arith.constant dense<0.000000e+00> : vector<2x8x8xf32>
    %68 = tpu.matmul %63, %65, %cst_15 {dimension_numbers = #tpu.dot_dimension_numbers<[2], [2], [1], [1], [0, 0, 0, 1, 1, 1], [0], [0]>} : vector<2x8x4xf32>, vector<2x8x4xf32>, vector<2x8x8xf32> -> vector<2x8x8xf32>
    "tpu.trace_stop"() : () -> ()
    %69 = vector.broadcast %23 : vector<1x8x8xf32> to vector<2x8x8xf32>
    %70 = arith.addf %68, %69 : vector<2x8x8xf32>
    %cst_16 = arith.constant dense<0xFF800000> : vector<2x8xf32>
    %71 = vector.multi_reduction <maximumf>, %70, %cst_16 [2] : vector<2x8x8xf32> to vector<2x8xf32>
    %72 = vector.shape_cast %71 : vector<2x8xf32> to vector<2x8x1xf32>
    %73 = vector.broadcast %72 : vector<2x8x1xf32> to vector<2x8x8xf32>
    %74 = arith.subf %70, %73 : vector<2x8x8xf32>
    %75 = math.exp %74 : vector<2x8x8xf32>
    %cst_17 = arith.constant dense<0.000000e+00> : vector<2x8xf32>
    %76 = vector.multi_reduction <add>, %75, %cst_17 [2] : vector<2x8x8xf32> to vector<2x8xf32>
    %77 = vector.shape_cast %76 : vector<2x8xf32> to vector<2x8x1xf32>
    %78 = vector.broadcast %77 : vector<2x8x1xf32> to vector<2x8x8xf32>
    %79 = arith.divf %75, %78 : vector<2x8x8xf32>
    "tpu.trace_start"() <{level = 10 : i32, message = "bqk,bkd->bqd"}> : () -> ()
    %cst_18 = arith.constant dense<0.000000e+00> : vector<2x8x4xf32>
    %80 = tpu.matmul %79, %67, %cst_18 {dimension_numbers = #tpu.dot_dimension_numbers<[2], [1], [1], [2], [0, 0, 0, 1, 1, 2], [0], [0]>} : vector<2x8x8xf32>, vector<2x8x4xf32>, vector<2x8x4xf32> -> vector<2x8x4xf32>
    "tpu.trace_stop"() : () -> ()
    %81 = vector.extract_strided_slice %16 {offsets = [0, 12], sizes = [16, 4], strides = [1, 1]} : vector<16x48xf32> to vector<16x4xf32>
    %82 = vector.shape_cast %81 : vector<16x4xf32> to vector<2x8x4xf32>
    %83 = vector.extract_strided_slice %16 {offsets = [0, 28], sizes = [16, 4], strides = [1, 1]} : vector<16x48xf32> to vector<16x4xf32>
    %84 = vector.shape_cast %83 : vector<16x4xf32> to vector<2x8x4xf32>
    %85 = vector.extract_strided_slice %16 {offsets = [0, 44], sizes = [16, 4], strides = [1, 1]} : vector<16x48xf32> to vector<16x4xf32>
    %86 = vector.shape_cast %85 : vector<16x4xf32> to vector<2x8x4xf32>
    "tpu.trace_start"() <{level = 10 : i32, message = "bqd,bkd->bqk"}> : () -> ()
    %cst_19 = arith.constant dense<0.000000e+00> : vector<2x8x8xf32>
    %87 = tpu.matmul %82, %84, %cst_19 {dimension_numbers = #tpu.dot_dimension_numbers<[2], [2], [1], [1], [0, 0, 0, 1, 1, 1], [0], [0]>} : vector<2x8x4xf32>, vector<2x8x4xf32>, vector<2x8x8xf32> -> vector<2x8x8xf32>
    "tpu.trace_stop"() : () -> ()
    %88 = vector.broadcast %23 : vector<1x8x8xf32> to vector<2x8x8xf32>
    %89 = arith.addf %87, %88 : vector<2x8x8xf32>
    %cst_20 = arith.constant dense<0xFF800000> : vector<2x8xf32>
    %90 = vector.multi_reduction <maximumf>, %89, %cst_20 [2] : vector<2x8x8xf32> to vector<2x8xf32>
    %91 = vector.shape_cast %90 : vector<2x8xf32> to vector<2x8x1xf32>
    %92 = vector.broadcast %91 : vector<2x8x1xf32> to vector<2x8x8xf32>
    %93 = arith.subf %89, %92 : vector<2x8x8xf32>
    %94 = math.exp %93 : vector<2x8x8xf32>
    %cst_21 = arith.constant dense<0.000000e+00> : vector<2x8xf32>
    %95 = vector.multi_reduction <add>, %94, %cst_21 [2] : vector<2x8x8xf32> to vector<2x8xf32>
    %96 = vector.shape_cast %95 : vector<2x8xf32> to vector<2x8x1xf32>
    %97 = vector.broadcast %96 : vector<2x8x1xf32> to vector<2x8x8xf32>
    %98 = arith.divf %94, %97 : vector<2x8x8xf32>
    "tpu.trace_start"() <{level = 10 : i32, message = "bqk,bkd->bqd"}> : () -> ()
    %cst_22 = arith.constant dense<0.000000e+00> : vector<2x8x4xf32>
    %99 = tpu.matmul %98, %86, %cst_22 {dimension_numbers = #tpu.dot_dimension_numbers<[2], [1], [1], [2], [0, 0, 0, 1, 1, 2], [0], [0]>} : vector<2x8x8xf32>, vector<2x8x4xf32>, vector<2x8x4xf32> -> vector<2x8x4xf32>
    "tpu.trace_stop"() : () -> ()
    %100 = tpu.concatenate %42, %61, %80, %99 in 2 : vector<2x8x4xf32>, vector<2x8x4xf32>, vector<2x8x4xf32>, vector<2x8x4xf32> -> vector<2x8x16xf32>
    %101 = vector.shape_cast %100 : vector<2x8x16xf32> to vector<16x16xf32>
    %102 = arith.truncf %101 : vector<16x16xf32> to vector<16x16xbf16>
    %c0_23 = arith.constant 0 : index
    %c0_24 = arith.constant 0 : index
    %103 = vector.load %arg3[%c0_23, %c0_24] : memref<16x32xbf16, #tpu.memory_space<vmem>>, vector<16x32xbf16>
    %cst_25 = arith.constant dense<0.000000e+00> : vector<16x32xf32>
    %104 = tpu.matmul %102, %103, %cst_25 {dimension_numbers = #tpu.dot_dimension_numbers<[1], [0], [0], [1], [0, 0, 1, 1], [], []>} : vector<16x16xbf16>, vector<16x32xbf16>, vector<16x32xf32> -> vector<16x32xf32>
    %105 = vector.shape_cast %3 : vector<32xf32> to vector<1x32xf32>
    %106 = vector.broadcast %105 : vector<1x32xf32> to vector<16x32xf32>
    %107 = arith.addf %104, %106 : vector<16x32xf32>
    %108 = arith.addf %0, %107 : vector<16x32xf32>
    %cst_26 = arith.constant dense<0.000000e+00> : vector<16xf32>
    %109 = vector.multi_reduction <add>, %108, %cst_26 [1] : vector<16x32xf32> to vector<16xf32>
    %110 = vector.shape_cast %109 : vector<16xf32> to vector<16x1xf32>
    %cst_27 = arith.constant 3.200000e+01 : f32
    %111 = vector.broadcast %cst_27 : f32 to vector<16x1xf32>
    %112 = arith.divf %110, %111 : vector<16x1xf32>
    %113 = vector.broadcast %112 : vector<16x1xf32> to vector<16x32xf32>
    %114 = arith.subf %108, %113 : vector<16x32xf32>
    %115 = arith.mulf %114, %114 : vector<16x32xf32>
    %cst_28 = arith.constant dense<0.000000e+00> : vector<16xf32>
    %116 = vector.multi_reduction <add>, %115, %cst_28 [1] : vector<16x32xf32> to vector<16xf32>
    %117 = vector.shape_cast %116 : vector<16xf32> to vector<16x1xf32>
    %cst_29 = arith.constant 3.200000e+01 : f32
    %118 = vector.broadcast %cst_29 : f32 to vector<16x1xf32>
    %119 = arith.divf %117, %118 : vector<16x1xf32>
    %120 = vector.broadcast %112 : vector<16x1xf32> to vector<16x32xf32>
    %121 = arith.subf %108, %120 : vector<16x32xf32>
    %cst_30 = arith.constant 9.99999974E-6 : f32
    %122 = vector.broadcast %cst_30 : f32 to vector<16x1xf32>
    %123 = arith.addf %119, %122 : vector<16x1xf32>
    %124 = math.rsqrt %123 : vector<16x1xf32>
    %125 = vector.broadcast %124 : vector<16x1xf32> to vector<16x32xf32>
    %126 = arith.mulf %121, %125 : vector<16x32xf32>
    %127 = vector.shape_cast %7 : vector<32xf32> to vector<1x32xf32>
    %128 = vector.broadcast %127 : vector<1x32xf32> to vector<16x32xf32>
    %129 = arith.mulf %126, %128 : vector<16x32xf32>
    %130 = vector.shape_cast %9 : vector<32xf32> to vector<1x32xf32>
    %131 = vector.broadcast %130 : vector<1x32xf32> to vector<16x32xf32>
    %132 = arith.addf %129, %131 : vector<16x32xf32>
    %c0_31 = arith.constant 0 : index
    %c0_32 = arith.constant 0 : index
    %133 = vector.load %arg5[%c0_31, %c0_32] : memref<1x128xf32, #tpu.memory_space<vmem>>, vector<1x128xf32>
    %134 = arith.truncf %132 : vector<16x32xf32> to vector<16x32xbf16>
    %cst_33 = arith.constant 0.000000e+00 : f32
    %135 = vector.broadcast %cst_33 : f32 to vector<16x32xf32>
    %c0_34 = arith.constant 0 : index
    %c0_35 = arith.constant 0 : index
    %136 = vector.load %arg4[%c0_34, %c0_35] : memref<32x128xbf16, #tpu.memory_space<vmem>>, vector<32x128xbf16>
    %cst_36 = arith.constant dense<0.000000e+00> : vector<16x128xf32>
    %137 = tpu.matmul %134, %136, %cst_36 {dimension_numbers = #tpu.dot_dimension_numbers<[1], [0], [0], [1], [0, 0, 1, 1], [], []>} : vector<16x32xbf16>, vector<32x128xbf16>, vector<16x128xf32> -> vector<16x128xf32>
    %138 = vector.shape_cast %133 : vector<1x128xf32> to vector<128xf32>
    %139 = vector.shape_cast %138 : vector<128xf32> to vector<1x128xf32>
    %140 = vector.broadcast %139 : vector<1x128xf32> to vector<16x128xf32>
    %141 = arith.addf %137, %140 : vector<16x128xf32>
    %cst_37 = arith.constant 0.000000e+00 : f32
    %142 = vector.broadcast %cst_37 : f32 to vector<16x128xf32>
    %143 = arith.maximumf %141, %142 : vector<16x128xf32>
    %144 = arith.truncf %143 : vector<16x128xf32> to vector<16x128xbf16>
    %c0_38 = arith.constant 0 : index
    %c0_39 = arith.constant 0 : index
    %145 = vector.load %arg6[%c0_38, %c0_39] : memref<128x32xbf16, #tpu.memory_space<vmem>>, vector<128x32xbf16>
    %cst_40 = arith.constant dense<0.000000e+00> : vector<16x32xf32>
    %146 = tpu.matmul %144, %145, %cst_40 {dimension_numbers = #tpu.dot_dimension_numbers<[1], [0], [0], [1], [0, 0, 1, 1], [], []>} : vector<16x128xbf16>, vector<128x32xbf16>, vector<16x32xf32> -> vector<16x32xf32>
    %147 = arith.addf %135, %146 : vector<16x32xf32>
    %148 = vector.shape_cast %5 : vector<32xf32> to vector<1x32xf32>
    %149 = vector.broadcast %148 : vector<1x32xf32> to vector<16x32xf32>
    %150 = arith.addf %147, %149 : vector<16x32xf32>
    %151 = arith.addf %132, %150 : vector<16x32xf32>
    %cst_41 = arith.constant dense<0.000000e+00> : vector<16xf32>
    %152 = vector.multi_reduction <add>, %151, %cst_41 [1] : vector<16x32xf32> to vector<16xf32>
    %153 = vector.shape_cast %152 : vector<16xf32> to vector<16x1xf32>
    %cst_42 = arith.constant 3.200000e+01 : f32
    %154 = vector.broadcast %cst_42 : f32 to vector<16x1xf32>
    %155 = arith.divf %153, %154 : vector<16x1xf32>
    %156 = vector.broadcast %155 : vector<16x1xf32> to vector<16x32xf32>
    %157 = arith.subf %151, %156 : vector<16x32xf32>
    %158 = arith.mulf %157, %157 : vector<16x32xf32>
    %cst_43 = arith.constant dense<0.000000e+00> : vector<16xf32>
    %159 = vector.multi_reduction <add>, %158, %cst_43 [1] : vector<16x32xf32> to vector<16xf32>
    %160 = vector.shape_cast %159 : vector<16xf32> to vector<16x1xf32>
    %cst_44 = arith.constant 3.200000e+01 : f32
    %161 = vector.broadcast %cst_44 : f32 to vector<16x1xf32>
    %162 = arith.divf %160, %161 : vector<16x1xf32>
    %163 = vector.broadcast %155 : vector<16x1xf32> to vector<16x32xf32>
    %164 = arith.subf %151, %163 : vector<16x32xf32>
    %cst_45 = arith.constant 9.99999974E-6 : f32
    %165 = vector.broadcast %cst_45 : f32 to vector<16x1xf32>
    %166 = arith.addf %162, %165 : vector<16x1xf32>
    %167 = math.rsqrt %166 : vector<16x1xf32>
    %168 = vector.broadcast %167 : vector<16x1xf32> to vector<16x32xf32>
    %169 = arith.mulf %164, %168 : vector<16x32xf32>
    %170 = vector.shape_cast %11 : vector<32xf32> to vector<1x32xf32>
    %171 = vector.broadcast %170 : vector<1x32xf32> to vector<16x32xf32>
    %172 = arith.mulf %169, %171 : vector<16x32xf32>
    %173 = vector.shape_cast %13 : vector<32xf32> to vector<1x32xf32>
    %174 = vector.broadcast %173 : vector<1x32xf32> to vector<16x32xf32>
    %175 = arith.addf %172, %174 : vector<16x32xf32>
    %c0_46 = arith.constant 0 : index
    %c0_47 = arith.constant 0 : index
    %176 = vector.load %arg8[%c0_46, %c0_47] : memref<16x32xf32, #tpu.memory_space<vmem>>, vector<16x32xf32>
    tpu.vector_store %arg8[%c0_46, %c0_47], %175 {strides = array<i32>} : memref<16x32xf32, #tpu.memory_space<vmem>>, vector<16x32xf32>,
    return
  }
  func.func @transform_0(%arg0: i32) -> (i32, i32) {
    %c0_i32 = arith.constant 0 : i32
    %c0_i32_0 = arith.constant 0 : i32
    return %arg0, %c0_i32 : i32, i32
  }
  func.func @transform_1(%arg0: i32) -> (i32, i32) {
    %c0_i32 = arith.constant 0 : i32
    %c0_i32_0 = arith.constant 0 : i32
    %c0_i32_1 = arith.constant 0 : i32
    return %c0_i32, %c0_i32_0 : i32, i32
  }
  func.func @transform_2(%arg0: i32) -> (i32, i32) {
    %c0_i32 = arith.constant 0 : i32
    %c0_i32_0 = arith.constant 0 : i32
    %c0_i32_1 = arith.constant 0 : i32
    return %c0_i32, %c0_i32_0 : i32, i32
  }
  func.func @transform_3(%arg0: i32) -> (i32, i32) {
    %c0_i32 = arith.constant 0 : i32
    %c0_i32_0 = arith.constant 0 : i32
    %c0_i32_1 = arith.constant 0 : i32
    return %c0_i32, %c0_i32_0 : i32, i32
  }
  func.func @transform_4(%arg0: i32) -> (i32, i32) {
    %c0_i32 = arith.constant 0 : i32
    %c0_i32_0 = arith.constant 0 : i32
    %c0_i32_1 = arith.constant 0 : i32
    return %c0_i32, %c0_i32_0 : i32, i32
  }
  func.func @transform_5(%arg0: i32) -> (i32, i32) {
    %c0_i32 = arith.constant 0 : i32
    %c0_i32_0 = arith.constant 0 : i32
    %c0_i32_1 = arith.constant 0 : i32
    return %c0_i32, %c0_i32_0 : i32, i32
  }
  func.func @transform_6(%arg0: i32) -> (i32, i32) {
    %c0_i32 = arith.constant 0 : i32
    %c0_i32_0 = arith.constant 0 : i32
    %c0_i32_1 = arith.constant 0 : i32
    return %c0_i32, %c0_i32_0 : i32, i32
  }
  func.func @transform_7(%arg0: i32) -> (i32, i32) {
    %c0_i32 = arith.constant 0 : i32
    %c0_i32_0 = arith.constant 0 : i32
    return %arg0, %c0_i32 : i32, i32
  }
}

</mosaic_0001>

<bundles_post_ra>
// kernel: tpu_custom_call.1
= control target key start
LH: loop header
LB: loop body
LE: loop exit
PB: predicated region body
PF: predicated region fallthrough
CT: control target
= control target key end

     0   :  { %v2108_v1 = vmov 0.0   ;;  %vm2109_vm0 = vmmov 0   ;;  %vm48_vm1 = vcmask 261120   ;;  %s2426_s0 = inlined_call_operand.vmem [shape: f32[16,32], index: 0, kind: input, shape index: {}]   ;;  %s2427_s1 = inlined_call_operand.vmem [shape: bf16[32,48], index: 1, kind: input, shape index: {}]   ;;  %s2428_s2 = inlined_call_operand.vmem [shape: bf16[16,32], index: 2, kind: input, shape index: {}]   ;;  %s2429_s3 = inlined_call_operand.vmem [shape: bf16[32,128], index: 3, kind: input, shape index: {}]   ;;  %s2430_s4 = inlined_call_operand.vmem [shape: f32[1,128], index: 4, kind: input, shape index: {}]   ;;  %s2431_s5 = inlined_call_operand.vmem [shape: bf16[128,32], index: 5, kind: input, shape index: {}]   ;;  %s2432_s6 = inlined_call_operand.vmem [shape: f32[8,32], index: 6, kind: input, shape index: {}]   ;;  %s2433_s7 = inlined_call_operand.hbm [shape: f32[16,32], index: 7, kind: output, shape index: {}]  }
   0x1   :  { %v2033_v0 = vld [vmem:[%s2427_s1 + $0x8] sm:$0xff]   ;;  %1877 = vmatprep.subr.bf16.mxu0 %v2108_v1  ;;  %v2034_v2 = vld [vmem:[%s2427_s1] sm:$0xff]   ;;  %1905 = vmatprep.subr.mxu1 %v2108_v1 }
   0x2   :  { %1878 = vmatpush3.bf16.msra.mxu0 %v2033_v0  ;;  %1881 = vmatprep.mubr.msk.bf16.mxu0 %vm2109_vm0, %v2108_v1  ;;  %v2180_v3 = vld [vmem:[%s2426_s0] sm:$0xff]  ;;  %v2185_v4 = vld [vmem:[%s2426_s0 + $0x8] sm:$0xff] }
   0x3   :  { %1879 = vmatprep.subr.bf16.mxu0 %v2108_v1  ;;  %1907 = vmatprep.mubr.msk.f32.mxu1 %vm2109_vm0, %v2108_v1  ;;  %v31_v5 = vpack.c.bf16 %v2185_v4, %v2180_v3 }
   0x6   :  { %1880 = vmatpush3.bf16.msra.mxu0 %v2034_v2 }
   0x7   :  { %1885 = vmatprep.subr.mxu0 %v2108_v1 }
   0x9   :  { %1882 = vmatmul.mubr.msk.bf16.vlgmr.msra.gmra.mxu0 %vm48_vm1, %v31_v5 }
   0xa   :  { %1887 = vmatprep.mubr.msk.f32.mxu0 %vm2109_vm0, %v2108_v1 }
   0xb   :  { %12 = vsyncpa [#allocation3], 0  ;;  %s2110_s0 = smov 112   ;;  %vm102_vm2 = vcmask 31744   ;;  %v93_v12 = vlaneseq  ;;  %v2111_v15 = vmov -1e+30  }
   0xc   :  { %vm254_vm4 = vcmask 64512   ;;  %s2112_s1 = smov 96   ;;  %s2113_s9 = smov 108   ;;  %vm1447_vm5 = vcmask 97280   ;;  %vm1463_vm6 = vcmask 130048  }
   0xd   :  { %v2214_v13 = vshrl.u32 %v93_v12, 7  ;;  %v96_v14 = vand.u32 127, %v93_v12  ;;  %s2114_s10 = smov 124   ;;  %s2115_s11 = smov 92  }
   0xe   :  { %s2116_s12 = smov 120   ;;  %s2117_s13 = smov 104  }
   0xf   :  { %vm97_vm3 = vcmp.le.s32.totalorder %v96_v14, %v2214_v13  ;;  %s2118_s14 = smov 88   ;;  %s2119_s15 = smov 100  }
  0x10   :  { %v2217_v16 = vsel %vm97_vm3, 0.0, %v2111_v15  ;;  %s2120_s16 = smov 116   ;;  %s2121_s17 = smov 84  }
  0x11   :  { %s2122_s18 = smov 4   ;;  %s2123_s19 = smov 8  }
  0x12   :  { %s2124_s22 = smov 12  }
  0xc9   :  { %v2196_v6 = vpop.f32.mrf.mxu0 }
  0xca   :  { %100 = vrot.lane.b32.xlu0 %v2196_v6, %s2110_s0 }
  0xcb   :  { %v1883_v7 = vpop.f32.mrf.mxu0 }
  0xcd   :  { %v2199_v8 = vpop.f32.mrf.mxu0 }
  0xce   :  { %178 = vrot.lane.b32.xlu0 %v2199_v8, %s2110_s0 }
  0xcf   :  { %v1884_v9 = vpop.f32.mrf.mxu0 }
 0x13c   :  { %v101_v10 = vpop.permute.xlu0 %100 }
 0x13d   :  { %1886 = vmatpush3.xpose.msk.msra.mxu0 %vm102_vm2, %v101_v10 }
 0x13e   :  { %1890 = vmatprep.subr.mxu0 %v2108_v1 }
 0x140   :  { %1888 = vmatmul.mubr.msk.f32.vlgmr.msra.gmra.mxu0 %vm102_vm2, %v2196_v6  ;;  %v179_v11 = vpop.permute.xlu0 %178 }
 0x141   :  { %1891 = vmatpush3.xpose.msk.msra.mxu0 %vm102_vm2, %v179_v11  ;;  %1892 = vmatprep.mubr.msk.f32.mxu0 %vm2109_vm0, %v2108_v1 }
 0x142   :  { %1895 = vmatprep.subr.mxu0 %v2108_v1 }
 0x144   :  { %1893 = vmatmul.mubr.msk.f32.vlgmr.msra.gmra.mxu0 %vm102_vm2, %v2199_v8 }
 0x145   :  { %1897 = vmatprep.mubr.msk.f32.mxu0 %vm2109_vm0, %v2108_v1 }
 0x200   :  { %v173_v17 = vpop.f32.mrf.mxu0 }
 0x201   :  { %v174_v18 = vadd.f32 %v173_v17, %v2217_v16 }
 0x202   :  { %v1889_v19 = vpop.f32.mrf.mxu0 }
 0x203   :  { %v255_v20 = vsel %vm254_vm4, %v174_v18, -inf }
 0x204   :  { %256 = vmax.xlane.f32.xlu1 %v255_v20  ;;  %v250_v21 = vpop.f32.mrf.mxu0 }
 0x205   :  { %v251_v22 = vadd.f32 %v250_v21, %v2217_v16 }
 0x206   :  { %v1894_v23 = vpop.f32.mrf.mxu0 }
 0x207   :  { %v258_v24 = vsel %vm254_vm4, %v251_v22, -inf }
 0x208   :  { %259 = vmax.xlane.f32.xlu1 %v258_v24 }
 0x219   :  { %277 = vrot.lane.b32.xlu1 %v2196_v6, %s2112_s1 }
 0x21d   :  { %353 = vrot.lane.b32.xlu1 %v2199_v8, %s2112_s1 }
 0x221   :  { %431 = vrot.lane.b32.xlu1 %v2196_v6, %s2113_s9 }
 0x225   :  { %509 = vrot.lane.b32.xlu1 %v2199_v8, %s2113_s9 }
 0x28d   :  { %v257_v25 = vpop.xlane.xlu1 %256 }
 0x28e   :  { %v261_v26 = vsub.f32 %v174_v18, %v257_v25 }
 0x290   :  { %v263_v27 = vmul.f32 1.442695, %v261_v26 }
 0x291   :  { %v260_v28 = vpop.xlane.xlu1 %259 }
 0x292   :  { %2046 = vpow2.f32 %v263_v27  ;;  %v262_v29 = vsub.f32 %v251_v22, %v260_v28 }
 0x294   :  { %v265_v30 = vmul.f32 1.442695, %v262_v29 }
 0x295   :  { %v278_v31 = vpop.permute.xlu1 %277 }
 0x296   :  { %2048 = vpow2.f32 %v265_v30  ;;  %1896 = vmatpush3.msra.mxu0 %v278_v31 }
 0x297   :  { %1900 = vmatprep.subr.mxu0 %v2108_v1 }
 0x299   :  { %v354_v32 = vpop.permute.xlu1 %353 }
 0x29d   :  { %v432_v33 = vpop.permute.xlu1 %431 }
 0x29e   :  { %1906 = vmatpush3.xpose.msk.msra.mxu1 %vm102_vm2, %v432_v33 }
 0x29f   :  { %v2047_v34 = vpop.eup %2046  ;;  %1915 = vmatprep.subr.mxu1 %v2108_v1 }
 0x2a0   :  { %v267_v35 = vsel %vm254_vm4, %v2047_v34, 0.0 }
 0x2a1   :  { %268 = vadd.xlane.f32.xlu0 %v267_v35  ;;  %v510_v38 = vpop.permute.xlu1 %509 }
 0x2a3   :  { %v2049_v36 = vpop.eup %2048 }
 0x2a4   :  { %v270_v37 = vsel %vm254_vm4, %v2049_v36, 0.0 }
 0x2a5   :  { %271 = vadd.xlane.f32.xlu1 %v270_v37 }
 0x2b6   :  { %507 = vrot.lane.b32.xlu1 %v2199_v8, %s2114_s10 }
 0x2b7   :  { %429 = vrot.lane.b32.xlu0 %v2196_v6, %s2114_s10 }
 0x32a   :  { %v269_v39 = vpop.xlane.xlu0 %268 }
 0x32b   :  { %2050 = vrcp.f32 %v269_v39 }
 0x32e   :  { %v430_v40 = vpop.permute.xlu0 %429  ;;  %v272_v41 = vpop.xlane.xlu1 %271 }
 0x32f   :  { %2052 = vrcp.f32 %v272_v41  ;;  %1908 = vmatmul.mubr.msk.f32.vlgmr.msra.gmra.mxu1 %vm102_vm2, %v430_v40 }
 0x330   :  { %1917 = vmatprep.mubr.msk.f32.mxu1 %vm2109_vm0, %v2108_v1 }
 0x332   :  { %v508_v46 = vpop.permute.xlu1 %507 }
 0x338   :  { %v2051_v42 = vpop.eup %2050 }
 0x339   :  { %v274_v43 = vmul.f32 %v2051_v42, %v2047_v34 }
 0x33b   :  { %1898 = vmatmul.mubr.msk.f32.vlgmr.msra.gmra.mxu0 %vm254_vm4, %v274_v43 }
 0x33c   :  { %v2053_v44 = vpop.eup %2052  ;;  %1901 = vmatpush3.msra.mxu0 %v354_v32  ;;  %1902 = vmatprep.mubr.msk.f32.mxu0 %vm2109_vm0, %v2108_v1 }
 0x33d   :  { %1910 = vmatprep.subr.mxu0 %v2108_v1  ;;  %v276_v45 = vmul.f32 %v2053_v44, %v2049_v36 }
 0x33f   :  { %1903 = vmatmul.mubr.msk.f32.vlgmr.msra.gmra.mxu0 %vm254_vm4, %v276_v45 }
 0x340   :  { %1911 = vmatpush3.xpose.msk.msra.mxu0 %vm102_vm2, %v510_v38  ;;  %1912 = vmatprep.mubr.msk.f32.mxu0 %vm2109_vm0, %v2108_v1 }
 0x341   :  { %1920 = vmatprep.subr.mxu0 %v2108_v1 }
 0x343   :  { %1913 = vmatmul.mubr.msk.f32.vlgmr.msra.gmra.mxu0 %vm102_vm2, %v508_v46 }
 0x344   :  { %1922 = vmatprep.mubr.msk.f32.mxu0 %vm2109_vm0, %v2108_v1 }
 0x3ef   :  { %v503_v47 = vpop.f32.mrf.mxu1 }
 0x3f0   :  { %v504_v48 = vadd.f32 %v503_v47, %v2217_v16 }
 0x3f1   :  { %v1909_v49 = vpop.f32.mrf.mxu1 }
 0x3f2   :  { %v585_v50 = vsel %vm254_vm4, %v504_v48, -inf }
 0x3f3   :  { %586 = vmax.xlane.f32.xlu1 %v585_v50 }
 0x3fb   :  { %v2251_v51 = vpop.f32.mrf.mxu0 }
 0x3fd   :  { %v1899_v52 = vpop.f32.mrf.mxu0 }
 0x3ff   :  { %v2253_v53 = vpop.f32.mrf.mxu0 }
 0x401   :  { %v1904_v54 = vpop.f32.mrf.mxu0 }
 0x403   :  { %v581_v55 = vpop.f32.mrf.mxu0 }
 0x404   :  { %v582_v56 = vadd.f32 %v581_v55, %v2217_v16 }
 0x405   :  { %v1914_v57 = vpop.f32.mrf.mxu0 }
 0x406   :  { %v588_v58 = vsel %vm254_vm4, %v582_v56, -inf }
 0x407   :  { %589 = vmax.xlane.f32.xlu0 %v588_v58 }
 0x41d   :  { %683 = vrot.lane.b32.xlu0 %v2199_v8, %s2115_s11 }
 0x421   :  { %759 = vrot.lane.b32.xlu0 %v2196_v6, %s2116_s12 }
 0x47c   :  { %v587_v59 = vpop.xlane.xlu1 %586 }
 0x47d   :  { %v591_v60 = vsub.f32 %v504_v48, %v587_v59 }
 0x47f   :  { %v593_v61 = vmul.f32 1.442695, %v591_v60 }
 0x481   :  { %2054 = vpow2.f32 %v593_v61 }
 0x48e   :  { %v2055_v62 = vpop.eup %2054 }
 0x48f   :  { %v597_v63 = vsel %vm254_vm4, %v2055_v62, 0.0 }
 0x490   :  { %598 = vadd.xlane.f32.xlu1 %v597_v63  ;;  %v590_v0 = vpop.xlane.xlu0 %589 }
 0x491   :  { %v592_v5 = vsub.f32 %v582_v56, %v590_v0 }
 0x493   :  { %v595_v7 = vmul.f32 1.442695, %v592_v5 }
 0x494   :  { %v684_v2 = vpop.permute.xlu0 %683 }
 0x495   :  { %1921 = vmatpush3.msra.mxu0 %v684_v2  ;;  %2056 = vpow2.f32 %v595_v7 }
 0x496   :  { %1930 = vmatprep.subr.mxu0 %v2108_v1 }
 0x498   :  { %v760_v18 = vpop.permute.xlu0 %759 }
 0x4a1   :  { %607 = vrot.lane.b32.xlu1 %v2196_v6, %s2115_s11 }
 0x4a2   :  { %v2057_v9 = vpop.eup %2056 }
 0x4a3   :  { %v600_v10 = vsel %vm254_vm4, %v2057_v9, 0.0 }
 0x4a5   :  { %761 = vrot.lane.b32.xlu1 %v2196_v6, %s2117_s13 }
 0x4a9   :  { %839 = vrot.lane.b32.xlu1 %v2199_v8, %s2117_s13 }
 0x4cd   :  { %601 = vadd.xlane.f32.xlu1 %v600_v10 }
 0x4de   :  { %837 = vrot.lane.b32.xlu1 %v2199_v8, %s2116_s12 }
 0x519   :  { %v599_v11 = vpop.xlane.xlu1 %598 }
 0x51a   :  { %2058 = vrcp.f32 %v599_v11 }
 0x51d   :  { %v608_v12 = vpop.permute.xlu1 %607 }
 0x51e   :  { %1916 = vmatpush3.msra.mxu1 %v608_v12 }
 0x51f   :  { %1925 = vmatprep.subr.mxu1 %v2108_v1 }
 0x521   :  { %v762_v17 = vpop.permute.xlu1 %761 }
 0x525   :  { %v840_v19 = vpop.permute.xlu1 %839 }
 0x527   :  { %v2059_v14 = vpop.eup %2058 }
 0x528   :  { %v604_v15 = vmul.f32 %v2059_v14, %v2055_v62 }
 0x52a   :  { %1918 = vmatmul.mubr.msk.f32.vlgmr.msra.gmra.mxu1 %vm254_vm4, %v604_v15 }
 0x52b   :  { %1926 = vmatpush3.xpose.msk.msra.mxu1 %vm102_vm2, %v762_v17  ;;  %1927 = vmatprep.mubr.msk.f32.mxu1 %vm2109_vm0, %v2108_v1 }
 0x52c   :  { %1935 = vmatprep.subr.mxu1 %v2108_v1 }
 0x52e   :  { %1928 = vmatmul.mubr.msk.f32.vlgmr.msra.gmra.mxu1 %vm102_vm2, %v760_v18 }
 0x52f   :  { %1937 = vmatprep.mubr.msk.f32.mxu1 %vm2109_vm0, %v2108_v1 }
 0x556   :  { %v602_v20 = vpop.xlane.xlu1 %601 }
 0x557   :  { %2060 = vrcp.f32 %v602_v20 }
 0x55a   :  { %v838_v23 = vpop.permute.xlu1 %837 }
 0x564   :  { %v2061_v21 = vpop.eup %2060 }
 0x565   :  { %v606_v22 = vmul.f32 %v2061_v21, %v2057_v9 }
 0x567   :  { %1923 = vmatmul.mubr.msk.f32.vlgmr.msra.gmra.mxu0 %vm254_vm4, %v606_v22 }
 0x568   :  { %1931 = vmatpush3.xpose.msk.msra.mxu0 %vm102_vm2, %v840_v19  ;;  %1932 = vmatprep.mubr.msk.f32.mxu0 %vm2109_vm0, %v2108_v1 }
 0x569   :  { %1940 = vmatprep.subr.mxu0 %v2108_v1 }
 0x56b   :  { %1933 = vmatmul.mubr.msk.f32.vlgmr.msra.gmra.mxu0 %vm102_vm2, %v838_v23 }
 0x56c   :  { %1942 = vmatprep.mubr.msk.f32.mxu0 %vm2109_vm0, %v2108_v1 }
 0x5ea   :  { %v2283_v24 = vpop.f32.mrf.mxu1 }
 0x5ec   :  { %v1919_v25 = vpop.f32.mrf.mxu1 }
 0x5ee   :  { %v833_v26 = vpop.f32.mrf.mxu1 }
 0x5ef   :  { %v834_v27 = vadd.f32 %v833_v26, %v2217_v16 }
 0x5f0   :  { %v1929_v28 = vpop.f32.mrf.mxu1 }
 0x5f1   :  { %v915_v29 = vsel %vm254_vm4, %v834_v27, -inf }
 0x5f2   :  { %916 = vmax.xlane.f32.xlu0 %v915_v29 }
 0x627   :  { %v2287_v30 = vpop.f32.mrf.mxu0 }
 0x628   :  { %v2018_v31 = vpack.i.bf16 %v2287_v30, %v2283_v24 }
 0x629   :  { %v1924_v32 = vpop.f32.mrf.mxu0 }
 0x62b   :  { %v911_v33 = vpop.f32.mrf.mxu0 }
 0x62c   :  { %v912_v34 = vadd.f32 %v911_v33, %v2217_v16 }
 0x62d   :  { %v1934_v35 = vpop.f32.mrf.mxu0 }
 0x62e   :  { %v918_v36 = vsel %vm254_vm4, %v912_v34, -inf }
 0x62f   :  { %919 = vmax.xlane.f32.xlu1 %v918_v36 }
 0x640   :  { %937 = vrot.lane.b32.xlu1 %v2196_v6, %s2118_s14 }
 0x644   :  { %1091 = vrot.lane.b32.xlu1 %v2196_v6, %s2119_s15 }
 0x648   :  { %1169 = vrot.lane.b32.xlu1 %v2199_v8, %s2119_s15 }
 0x64c   :  { %1167 = vrot.lane.b32.xlu1 %v2199_v8, %s2120_s16 }
 0x67b   :  { %v917_v37 = vpop.xlane.xlu0 %916 }
 0x67c   :  { %v921_v38 = vsub.f32 %v834_v27, %v917_v37 }
 0x67e   :  { %v923_v39 = vmul.f32 1.442695, %v921_v38 }
 0x680   :  { %2062 = vpow2.f32 %v923_v39 }
 0x68d   :  { %v2063_v40 = vpop.eup %2062 }
 0x68e   :  { %v927_v41 = vsel %vm254_vm4, %v2063_v40, 0.0 }
 0x68f   :  { %928 = vadd.xlane.f32.xlu0 %v927_v41 }
 0x6b8   :  { %v920_v42 = vpop.xlane.xlu1 %919 }
 0x6b9   :  { %v922_v43 = vsub.f32 %v912_v34, %v920_v42  ;;  %v2035_v34 = vld [vmem:[%s2428_s2] sm:$0xff]  }
 0x6bb   :  { %v925_v44 = vmul.f32 1.442695, %v922_v43 }
 0x6bc   :  { %v938_v45 = vpop.permute.xlu1 %937 }
 0x6bd   :  { %2064 = vpow2.f32 %v925_v44  ;;  %1936 = vmatpush3.msra.mxu1 %v938_v45 }
 0x6be   :  { %1945 = vmatprep.subr.mxu1 %v2108_v1 }
 0x6c0   :  { %v1092_v52 = vpop.permute.xlu1 %1091 }
 0x6c4   :  { %v1170_v58 = vpop.permute.xlu1 %1169 }
 0x6c8   :  { %v1168_v60 = vpop.permute.xlu1 %1167 }
 0x6ca   :  { %v2065_v46 = vpop.eup %2064 }
 0x6cb   :  { %v930_v47 = vsel %vm254_vm4, %v2065_v46, 0.0 }
 0x6cc   :  { %931 = vadd.xlane.f32.xlu0 %v930_v47 }
 0x6e2   :  { %1013 = vrot.lane.b32.xlu0 %v2199_v8, %s2118_s14 }
 0x6e6   :  { %1089 = vrot.lane.b32.xlu0 %v2196_v6, %s2120_s16 }
 0x718   :  { %v929_v48 = vpop.xlane.xlu0 %928 }
 0x719   :  { %2066 = vrcp.f32 %v929_v48 }
 0x726   :  { %v2067_v49 = vpop.eup %2066 }
 0x727   :  { %v934_v50 = vmul.f32 %v2067_v49, %v2063_v40 }
 0x729   :  { %1938 = vmatmul.mubr.msk.f32.vlgmr.msra.gmra.mxu1 %vm254_vm4, %v934_v50 }
 0x72a   :  { %1946 = vmatpush3.xpose.msk.msra.mxu1 %vm102_vm2, %v1092_v52  ;;  %1947 = vmatprep.mubr.msk.f32.mxu1 %vm2109_vm0, %v2108_v1 }
 0x72b   :  { %1955 = vmatprep.subr.mxu1 %v2108_v1 }
 0x755   :  { %v932_v54 = vpop.xlane.xlu0 %931 }
 0x756   :  { %2068 = vrcp.f32 %v932_v54 }
 0x759   :  { %v1014_v55 = vpop.permute.xlu0 %1013 }
 0x75a   :  { %1941 = vmatpush3.msra.mxu0 %v1014_v55 }
 0x75b   :  { %1950 = vmatprep.subr.mxu0 %v2108_v1 }
 0x75d   :  { %v1090_v56 = vpop.permute.xlu0 %1089 }
 0x75e   :  { %1948 = vmatmul.mubr.msk.f32.vlgmr.msra.gmra.mxu1 %vm102_vm2, %v1090_v56  ;;  %v1455_v56 = vsub.s32 0, %v2214_v13 }
 0x75f   :  { %1957 = vmatprep.mubr.msk.f32.mxu1 %vm2109_vm0, %v2108_v1 }
 0x763   :  { %v2069_v57 = vpop.eup %2068 }
 0x764   :  { %v936_v59 = vmul.f32 %v2069_v57, %v2065_v46 }
 0x766   :  { %1943 = vmatmul.mubr.msk.f32.vlgmr.msra.gmra.mxu0 %vm254_vm4, %v936_v59 }
 0x767   :  { %1951 = vmatpush3.xpose.msk.msra.mxu0 %vm102_vm2, %v1170_v58  ;;  %1952 = vmatprep.mubr.msk.f32.mxu0 %vm2109_vm0, %v2108_v1 }
 0x768   :  { %1960 = vmatprep.subr.mxu0 %v2108_v1 }
 0x76a   :  { %1953 = vmatmul.mubr.msk.f32.vlgmr.msra.gmra.mxu0 %vm102_vm2, %v1168_v60 }
 0x76b   :  { %1962 = vmatprep.mubr.msk.f32.mxu0 %vm2109_vm0, %v2108_v1 }
 0x7e9   :  { %v1009_v61 = vpop.f32.mrf.mxu1 }
 0x7eb   :  { %v1939_v62 = vpop.f32.mrf.mxu1 }
 0x81e   :  { %v1163_v63 = vpop.f32.mrf.mxu1 }
 0x81f   :  { %v1164_v0 = vadd.f32 %v1163_v63, %v2217_v16 }
 0x820   :  { %v1949_v2 = vpop.f32.mrf.mxu1 }
 0x821   :  { %v1245_v5 = vsel %vm254_vm4, %v1164_v0, -inf }
 0x822   :  { %1246 = vmax.xlane.f32.xlu0 %v1245_v5 }
 0x826   :  { %v1085_v7 = vpop.f32.mrf.mxu0 }
 0x827   :  { %v2023_v15 = vpack.i.bf16 %v1085_v7, %v1009_v61 }
 0x828   :  { %v1944_v9 = vpop.f32.mrf.mxu0 }
 0x82a   :  { %v1241_v10 = vpop.f32.mrf.mxu0 }
 0x82b   :  { %v1242_v11 = vadd.f32 %v1241_v10, %v2217_v16 }
 0x82c   :  { %v1954_v12 = vpop.f32.mrf.mxu0 }
 0x82d   :  { %v1248_v14 = vsel %vm254_vm4, %v1242_v11, -inf }
 0x82e   :  { %1249 = vmax.xlane.f32.xlu1 %v1248_v14 }
 0x83f   :  { %1267 = vrot.lane.b32.xlu1 %v2196_v6, %s2121_s17 }
 0x843   :  { %2019 = vrot.lane.b32.xlu1 %v2018_v31, %s2122_s18 }
 0x847   :  { %2024 = vrot.lane.b32.xlu1 %v2023_v15, %s2123_s19 }
 0x8ab   :  { %v1247_v17 = vpop.xlane.xlu0 %1246 }
 0x8ac   :  { %v1251_v18 = vsub.f32 %v1164_v0, %v1247_v17 }
 0x8ae   :  { %v1253_v19 = vmul.f32 1.442695, %v1251_v18 }
 0x8b0   :  { %2070 = vpow2.f32 %v1253_v19  ;;  %v2037_v19 = vld [vmem:[%s2429_s3] sm:$0xff]  }
 0x8b7   :  { %v1250_v16 = vpop.xlane.xlu1 %1249 }
 0x8b8   :  { %v1252_v20 = vsub.f32 %v1242_v11, %v1250_v16  ;;  %v2038_v16 = vld [vmem:[%s2431_s5 + $0x38] sm:$0xff]  }
 0x8ba   :  { %v1255_v21 = vmul.f32 1.442695, %v1252_v20  ;;  %v2039_v20 = vld [vmem:[%s2431_s5 + $0x30] sm:$0xff]  }
 0x8bb   :  { %v1268_v22 = vpop.permute.xlu1 %1267 }
 0x8bc   :  { %2072 = vpow2.f32 %v1255_v21  ;;  %1956 = vmatpush3.msra.mxu1 %v1268_v22  ;;  %v2040_v21 = vld [vmem:[%s2431_s5 + $0x28] sm:$0xff]   ;;  %v2041_v22 = vld [vmem:[%s2431_s5 + $0x20] sm:$0xff]  }
 0x8bd   :  { %v2071_v6 = vpop.eup %2070  ;;  %1965 = vmatprep.subr.bf16.mxu1 %v2108_v1 }
 0x8be   :  { %v1257_v23 = vsel %vm254_vm4, %v2071_v6, 0.0 }
 0x8bf   :  { %1258 = vadd.xlane.f32.xlu0 %v1257_v23  ;;  %v2020_v38 = vpop.permute.xlu1 %2019 }
 0x8c0   :  { %v2022_v40 = vunpack.i.h.bf16 %v2020_v38  ;;  %v2021_v41 = vunpack.i.l.bf16 %v2020_v38 }
 0x8c2   :  { %v1444_v45 = vsel %vm102_vm2, %v2253_v53, %v2022_v40  ;;  %v1443_v46 = vsel %vm102_vm2, %v2251_v51, %v2021_v41  ;;  %v2355_v51 = vld [vmem:[%s2432_s6] sm:$0xff]  ;;  %v2043_v41 = vld [vmem:[%s2431_s5 + $0x10] sm:$0xff]  }
 0x8c3   :  { %v2025_v39 = vpop.permute.xlu1 %2024  ;;  %v1456_v53 = vrot.slane %v2355_v51, %v1455_v56 }
 0x8c4   :  { %v2027_v42 = vunpack.i.h.bf16 %v2025_v39  ;;  %v2026_v43 = vunpack.i.l.bf16 %v2025_v39 }
 0x8c6   :  { %v1445_v49 = vsel %vm254_vm4, %v1443_v46, %v2026_v43  ;;  %v1446_v50 = vsel %vm254_vm4, %v1444_v45, %v2027_v42  ;;  %v2044_v42 = vld [vmem:[%s2431_s5 + $0x8] sm:$0xff]   ;;  %v2045_v43 = vld [vmem:[%s2431_s5] sm:$0xff]  }
 0x8c9   :  { %v2073_v24 = vpop.eup %2072 }
 0x8ca   :  { %v1260_v25 = vsel %vm254_vm4, %v2073_v24, 0.0 }
 0x8cb   :  { %1261 = vadd.xlane.f32.xlu0 %v1260_v25 }
 0x8e1   :  { %1343 = vrot.lane.b32.xlu0 %v2199_v8, %s2121_s17 }
 0x948   :  { %v1259_v26 = vpop.xlane.xlu0 %1258 }
 0x949   :  { %2074 = vrcp.f32 %v1259_v26 }
 0x954   :  { %v1262_v27 = vpop.xlane.xlu0 %1261 }
 0x955   :  { %2076 = vrcp.f32 %v1262_v27 }
 0x956   :  { %v2075_v28 = vpop.eup %2074 }
 0x957   :  { %v1264_v29 = vmul.f32 %v2075_v28, %v2071_v6  ;;  %v2042_v6 = vld [vmem:[%s2431_s5 + $0x18] sm:$0xff]  }
 0x958   :  { %v1344_v30 = vpop.permute.xlu0 %1343 }
 0x959   :  { %1958 = vmatmul.mubr.msk.f32.vlgmr.msra.gmra.mxu1 %vm254_vm4, %v1264_v29  ;;  %1961 = vmatpush3.msra.mxu0 %v1344_v30  ;;  %v1539_v29 = vsub.s32 2, %v2214_v13 }
 0x95a   :  { %1967 = vmatprep.mubr.msk.bf16.mxu1 %vm2109_vm0, %v2108_v1  ;;  %1971 = vmatprep.subr.bf16.mxu0 %v2108_v1 }
 0x95b   :  { %1966 = vmatpush3.bf16.msra.mxu1 %v2035_v34 }
 0x95c   :  { %1979 = vmatprep.subr.bf16.mxu1 %v2108_v1 }
 0x962   :  { %v2077_v31 = vpop.eup %2076 }
 0x963   :  { %v1266_v32 = vmul.f32 %v2077_v31, %v2073_v24 }
 0x965   :  { %1963 = vmatmul.mubr.msk.f32.vlgmr.msra.gmra.mxu0 %vm254_vm4, %v1266_v32  ;;  %v1540_v32 = vrot.slane %v2355_v51, %v1539_v29 }
 0x966   :  { %1975 = vmatprep.mubr.msk.bf16.mxu0 %vm2109_vm0, %v2108_v1 }
 0xa19   :  { %v1339_v8 = vpop.f32.mrf.mxu1 }
 0xa1b   :  { %v1959_v33 = vpop.f32.mrf.mxu1 }
 0xa25   :  { %v1415_v35 = vpop.f32.mrf.mxu0 }
 0xa26   :  { %v2028_v36 = vpack.i.bf16 %v1415_v35, %v1339_v8  ;;  %v1545_v8 = vsub.s32 3, %v2214_v13 }
 0xa27   :  { %v1964_v37 = vpop.f32.mrf.mxu0 }
 0xa28   :  { %2029 = vrot.lane.b32.xlu0 %v2028_v36, %s2124_s22  ;;  %v1546_v36 = vrot.slane %v2355_v51, %v1545_v8 }
 0xa9a   :  { %v2030_v44 = vpop.permute.xlu0 %2029 }
 0xa9b   :  { %v2032_v47 = vunpack.i.h.bf16 %v2030_v44  ;;  %v2031_v48 = vunpack.i.l.bf16 %v2030_v44  ;;  %v1816_v44 = vld [vmem:[%s2430_s4] ss:$0 sm:$0xff]  ;;  %s2125_s4 = smov [#allocation2]  }
 0xa9c   :  { %s1776_s5 = sshll.u32 %s2125_s4, 4  ;;  %s1777_s5 = int_to_ptr.vmem [resolvable:$true] %s1776_s5 }
 0xa9d   :  { %v1449_v52 = vsel %vm1447_vm5, %v1446_v50, %v2032_v47  ;;  %v1448_v54 = vsel %vm1447_vm5, %v1445_v49, %v2031_v48  ;;  %s2086_s20 = scalar_lea.vmem %s1777_s5, 256  ;;  %p2091_p1 = scmp.lt.s32.totalorder %s1777_s5, %s1777_s5 }
 0xa9e   :  { %v1450_v55 = vpack.c.bf16 %v1449_v52, %v1448_v54  ;;  %p2087_p0 = scmp.ne.s32.totalorder %s1777_s5, %s2086_s20  ;;  %p2092_p2 = scmp.lt.s32.totalorder %s2086_s20, %s2086_s20 }
 0xaa0   :  { %1968 = vmatmul.mubr.msk.bf16.vlgmr.msra.gmra.mxu1 %vm1463_vm6, %v1450_v55  ;;  %p2093_p3 = por %p2092_p2, %p2091_p1 }
 0xaa1   :  { %1995 = vmatprep.mubr.msk.bf16.mxu1 %vm2109_vm0, %v2108_v1  ;;  %1980 = vmatpush3.bf16.msra.mxu1 %v2038_v16 }
 0xaa2   :  { %1981 = vmatprep.subr.bf16.mxu1 %v2108_v1  ;;  %p2094_p4 = pnand %p2093_p3, %p2087_p0 }
 0xaa5   :  { %1982 = vmatpush3.bf16.msra.mxu1 %v2039_v20 }
 0xaa6   :  { %1983 = vmatprep.subr.bf16.mxu1 %v2108_v1 }
 0xaa9   :  { %1984 = vmatpush3.bf16.msra.mxu1 %v2040_v21 }
 0xaaa   :  { %1985 = vmatprep.subr.bf16.mxu1 %v2108_v1 }
 0xaad   :  { %1986 = vmatpush3.bf16.msra.mxu1 %v2041_v22  ;;  %v1759_v22 = vsub.s32 4, %v2214_v13 }
 0xaae   :  { %1987 = vmatprep.subr.bf16.mxu1 %v2108_v1 }
 0xab1   :  { %1988 = vmatpush3.bf16.msra.mxu1 %v2042_v6  ;;  %v1765_v6 = vsub.s32 5, %v2214_v13 }
 0xab2   :  { %1989 = vmatprep.subr.bf16.mxu1 %v2108_v1 }
 0xab5   :  { %1990 = vmatpush3.bf16.msra.mxu1 %v2043_v41 }
 0xab6   :  { %1991 = vmatprep.subr.bf16.mxu1 %v2108_v1 }
 0xab9   :  { %1992 = vmatpush3.bf16.msra.mxu1 %v2044_v42 }
 0xaba   :  { %1993 = vmatprep.subr.bf16.mxu1 %v2108_v1 }
 0xabd   :  { %1994 = vmatpush3.bf16.msra.mxu1 %v2045_v43 }
 0xb60   :  { %v1501_v57 = vpop.f32.mrf.mxu1 }
 0xb61   :  { %v1502_v58 = vadd.f32 %v1501_v57, %v1456_v53 }
 0xb62   :  { %v1969_v59 = vpop.f32.mrf.mxu1 }
 0xb63   :  { %v1508_v60 = vadd.f32 %v1502_v58, %v2180_v3 }
 0xb64   :  { %v1504_v61 = vpop.f32.mrf.mxu1 }
 0xb65   :  { %v1505_v62 = vadd.f32 %v1504_v61, %v1456_v53  ;;  %v1510_v63 = vsel %vm48_vm1, %v1508_v60, 0.0 }
 0xb66   :  { %1511 = vadd.xlane.f32.xlu1 %v1510_v63  ;;  %v1970_v0 = vpop.f32.mrf.mxu1 }
 0xb67   :  { %v1509_v2 = vadd.f32 %v1505_v62, %v2185_v4  ;;  %v2036_v4 = vld [vmem:[%s2429_s3 + $0x8] sm:$0xff]  }
 0xb68   :  { %1972 = vmatpush3.bf16.msra.mxu0 %v2036_v4 }
 0xb69   :  { %v1513_v5 = vsel %vm48_vm1, %v1509_v2, 0.0  ;;  %1973 = vmatprep.subr.bf16.mxu0 %v2108_v1  ;;  %v1638_v1 = vsub.s32 1, %v2214_v13 }
 0xb6a   :  { %1514 = vadd.xlane.f32.xlu0 %v1513_v5 }
 0xb6b   :  { %v1639_v56 = vrot.slane %v2355_v51, %v1638_v1 }
 0xb6c   :  { %1974 = vmatpush3.bf16.msra.mxu0 %v2037_v19 }
 0xbef   :  { %v1512_v7 = vpop.xlane.xlu1 %1511 }
 0xbf0   :  { %v1517_v9 = vmul.f32 0.03125, %v1512_v7 }
 0xbf2   :  { %v1519_v10 = vsub.f32 %v1508_v60, %v1517_v9 }
 0xbf3   :  { %v1515_v11 = vpop.xlane.xlu0 %1514 }
 0xbf4   :  { %v1518_v12 = vmul.f32 0.03125, %v1515_v11  ;;  %v1521_v14 = vmul.f32 %v1519_v10, %v1519_v10 }
 0xbf6   :  { %v1520_v15 = vsub.f32 %v1509_v2, %v1518_v12  ;;  %v1523_v3 = vsel %vm48_vm1, %v1521_v14, 0.0 }
 0xbf7   :  { %1524 = vadd.xlane.f32.xlu0 %v1523_v3 }
 0xbf8   :  { %v1522_v17 = vmul.f32 %v1520_v15, %v1520_v15 }
 0xbfa   :  { %v1526_v18 = vsel %vm48_vm1, %v1522_v17, 0.0 }
 0xbfb   :  { %1527 = vadd.xlane.f32.xlu1 %v1526_v18 }
 0xc80   :  { %v1525_v23 = vpop.xlane.xlu0 %1524 }
 0xc81   :  { %v1529_v24 = vmul.f32 0.03125, %v1525_v23  ;;  %v1760_v23 = vrot.slane %v2355_v51, %v1759_v22 }
 0xc83   :  { %v1531_v25 = vadd.f32 1e-05, %v1529_v24 }
 0xc84   :  { %v1528_v26 = vpop.xlane.xlu1 %1527 }
 0xc85   :  { %2078 = vrsqrt.f32 %v1531_v25  ;;  %v1530_v27 = vmul.f32 0.03125, %v1528_v26  ;;  %v1766_v26 = vrot.slane %v2355_v51, %v1765_v6 }
 0xc87   :  { %v1532_v28 = vadd.f32 1e-05, %v1530_v27 }
 0xc89   :  { %2080 = vrsqrt.f32 %v1532_v28 }
 0xc92   :  { %v2079_v30 = vpop.eup %2078 }
 0xc93   :  { %v1535_v31 = vmul.f32 %v2079_v30, %v1519_v10 }
 0xc95   :  { %v1541_v35 = vmul.f32 %v1540_v32, %v1535_v31 }
 0xc96   :  { %v2081_v33 = vpop.eup %2080 }
 0xc97   :  { %v1536_v34 = vmul.f32 %v2081_v33, %v1520_v15  ;;  %v1547_v38 = vadd.f32 %v1546_v36, %v1541_v35 }
 0xc99   :  { %v1542_v37 = vmul.f32 %v1540_v32, %v1536_v34 }
 0xc9b   :  { %v1548_v39 = vadd.f32 %v1546_v36, %v1542_v37 }
 0xc9d   :  { %v1550_v40 = vpack.c.bf16 %v1548_v39, %v1547_v38 }
 0xc9f   :  { %1976 = vmatmul.mubr.msk.bf16.vlgmr.msra.gmra.mxu0 %vm48_vm1, %v1550_v40 }
 0xd5f   :  { %v1610_v45 = vpop.f32.mrf.mxu0 }
 0xd60   :  { %v1611_v47 = vadd.f32 %v1816_v44, %v1610_v45 }
 0xd61   :  { %v1977_v46 = vpop.f32.mrf.mxu0 }
 0xd62   :  { %v1617_v52 = vmax.f32 %v1611_v47, 0.0 }
 0xd63   :  { %v1613_v48 = vpop.f32.mrf.mxu0 }
 0xd64   :  { %v1614_v49 = vadd.f32 %v1816_v44, %v1613_v48 }
 0xd65   :  { %v1978_v50 = vpop.f32.mrf.mxu0 }
 0xd66   :  { %v1618_v54 = vmax.f32 %v1614_v49, 0.0 }
 0xd68   :  { %v1619_v55 = vpack.c.bf16 %v1618_v54, %v1617_v52 }
 0xd6a   :  { %1996 = vmatmul.mubr.bf16.vlgmr.msra.gmra.mxu1 %v1619_v55 }
 0xe2a   :  { %v1722_v53 = vpop.f32.mrf.mxu1 }
 0xe2b   :  { %v1723_v57 = vadd.f32 %v1722_v53, %v1639_v56 }
 0xe2c   :  { %v1997_v58 = vpop.f32.mrf.mxu1 }
 0xe2d   :  { %v1729_v59 = vadd.f32 %v1723_v57, %v1547_v38 }
 0xe2e   :  { %v1725_v60 = vpop.f32.mrf.mxu1 }
 0xe2f   :  { %v1726_v61 = vadd.f32 %v1725_v60, %v1639_v56  ;;  %v1731_v62 = vsel %vm48_vm1, %v1729_v59, 0.0 }
 0xe30   :  { %1732 = vadd.xlane.f32.xlu0 %v1731_v62  ;;  %v1998_v63 = vpop.f32.mrf.mxu1 }
 0xe31   :  { %v1730_v0 = vadd.f32 %v1726_v61, %v1548_v39 }
 0xe33   :  { %v1734_v2 = vsel %vm48_vm1, %v1730_v0, 0.0 }
 0xe34   :  { %1735 = vadd.xlane.f32.xlu1 %v1734_v2 }
 0xeb9   :  { %v1733_v5 = vpop.xlane.xlu0 %1732 }
 0xeba   :  { %v1737_v7 = vmul.f32 0.03125, %v1733_v5 }
 0xebc   :  { %v1739_v9 = vsub.f32 %v1729_v59, %v1737_v7 }
 0xebd   :  { %v1736_v10 = vpop.xlane.xlu1 %1735 }
 0xebe   :  { %v1738_v11 = vmul.f32 0.03125, %v1736_v10  ;;  %v1741_v12 = vmul.f32 %v1739_v9, %v1739_v9 }
 0xec0   :  { %v1740_v14 = vsub.f32 %v1730_v0, %v1738_v11  ;;  %v1743_v15 = vsel %vm48_vm1, %v1741_v12, 0.0 }
 0xec1   :  { %1744 = vadd.xlane.f32.xlu0 %v1743_v15 }
 0xec2   :  { %v1742_v3 = vmul.f32 %v1740_v14, %v1740_v14 }
 0xec4   :  { %v1746_v17 = vsel %vm48_vm1, %v1742_v3, 0.0 }
 0xec5   :  { %1747 = vadd.xlane.f32.xlu1 %v1746_v17 }
 0xf4a   :  { %v1745_v18 = vpop.xlane.xlu0 %1744 }
 0xf4b   :  { %v1749_v4 = vmul.f32 0.03125, %v1745_v18 }
 0xf4d   :  { %v1751_v19 = vadd.f32 1e-05, %v1749_v4 }
 0xf4e   :  { %v1748_v16 = vpop.xlane.xlu1 %1747 }
 0xf4f   :  { %2082 = vrsqrt.f32 %v1751_v19  ;;  %v1750_v20 = vmul.f32 0.03125, %v1748_v16 }
 0xf51   :  { %v1752_v21 = vadd.f32 1e-05, %v1750_v20 }
 0xf53   :  { %2084 = vrsqrt.f32 %v1752_v21 }
 0xf5c   :  { %v2083_v24 = vpop.eup %2082 }
 0xf5d   :  { %v1755_v25 = vmul.f32 %v2083_v24, %v1739_v9 }
 0xf5f   :  { %v1761_v27 = vmul.f32 %v1760_v23, %v1755_v25 }
 0xf60   :  { %v2085_v28 = vpop.eup %2084 }
 0xf61   :  { %v1756_v29 = vmul.f32 %v2085_v28, %v1740_v14  ;;  %v1767_v30 = vadd.f32 %v1766_v26, %v1761_v27 }
 0xf63   :  { %v1762_v31 = vmul.f32 %v1760_v23, %v1756_v29  ;;  %1769 = vst.msk [vmem:[#allocation2] sm:$0xff] %vm48_vm1, %v1767_v30 }
 0xf65   :  { %v1768_v32 = vadd.f32 %v1766_v26, %v1762_v31 }
 0xf67   :  { %1770 = vst.msk [vmem:[#allocation2 + $0x8] sm:$0xff] %vm48_vm1, %v1768_v32 }
 0xf68   :  { %2097 = shalt.err (!%p2094_p4)
}
 0xf69   :  { %s2126_s21 = smov 128  }
 0xf6a   :  { %1782 = dma.vmem_to_hbm [thread:$0]  %s1777_s5, 256, %s2433_s7, [#allocation3], %s2126_s21, %s2126_s21, %s2123_s19  }
 0xf6b   :  { %2106 = dma.done.wait [#allocation3], 256  }
 0xf6c   :  { %2107 = vsyncadd [#allocation3], 4294967040 }
 0xf6d   :  { %1786 = vsyncpa [#allocation3], 1 }

</bundles_post_ra>
